<compile_context>
chip_gen: v5e
topology: v5e:2x2
jax: 0.10.0
libtpu: 0.0.40
codegen_flags: <defaults>
</compile_context>

<pallas_src>
import functools

import jax
import jax.numpy as jnp
from jax.experimental import pallas as pl
from jax.experimental.pallas import tpu as pltpu

EPS = 1e-6
_LANE = 128


def _pick_tiles(nc, hw, itemsize, target_block_bytes):
    """Choose (block_rows, block_hw) for a ~target_block_bytes input tile."""
    # Sublane alignment: f32 -> 8 rows, bf16 -> 16, 8-bit -> 32.
    row_align = 8 * max(1, 4 // itemsize)
    max_elems = max(row_align * _LANE, target_block_bytes // itemsize)

    if nc <= row_align:
        # Single (full) row block; cannot split further.
        block_rows = nc
    else:
        # Budget-based cap on rows per tile.
        rows_budget = max(row_align,
                          (max_elems // max(hw, 1)) // row_align * row_align)
        # Keep >= 2 row tiles so both v7x TensorCores get work on the
        # "parallel" axis.
        half = max(row_align, pl.cdiv(pl.cdiv(nc, 2), row_align) * row_align)
        full = pl.cdiv(nc, row_align) * row_align
        block_rows = min(rows_budget, half, full)

    # Spatial tile: full HW when it fits the budget, otherwise multiples of
    # 128 lanes (ragged tail handled in-kernel on the last spatial tile only).
    if block_rows * hw <= max_elems or hw <= _LANE:
        block_hw = hw
    else:
        bhw = max(_LANE, (max_elems // max(block_rows, 1)) // _LANE * _LANE)
        block_hw = hw if bhw >= hw else bhw

    return block_rows, block_hw


def _gem_kernel(p_ref, x_ref, o_ref, acc_ref, *, hw, block_hw, compute_dtype):
    # p_ref:   SMEM (1,) f32   -- learnable exponent p
    # x_ref:   VMEM (block_rows, block_hw) tile in the input dtype
    # o_ref:   VMEM (block_rows, 1) output tile
    # acc_ref: VMEM (block_rows, 1) f32 partial-sum accumulator
    k = pl.program_id(1)
    last_k = pl.num_programs(1) - 1

    @pl.when(k == 0)
    def _init():
        acc_ref[...] = jnp.zeros_like(acc_ref)

    p = p_ref[0]
    x = jnp.maximum(x_ref[...].astype(compute_dtype), EPS)   # clamp(min=eps)
    # x ** p with a traced exponent (EUP); stays in compute_dtype (bf16 inputs
    # keep bf16 EUP math on v6e/v7x) -- accumulation below is f32.
    xp = jnp.exp(jnp.log(x) * p.astype(compute_dtype)).astype(jnp.float32)

    if hw % block_hw != 0:
        # Ragged spatial tail: mask padded lanes only on the last spatial
        # tile.  Mask *after* the pow (select is safe even if the padding
        # holds NaN/garbage); never mask via a zeroed multiplier.
        @pl.when(k != last_k)
        def _accum_full():
            acc_ref[...] += jnp.sum(xp, axis=1, keepdims=True)

        @pl.when(k == last_k)
        def _accum_masked():
            col = jax.lax.broadcasted_iota(jnp.int32, xp.shape, 1)
            valid = col + k * block_hw < hw
            acc_ref[...] += jnp.sum(jnp.where(valid, xp, 0.0), axis=1,
                                    keepdims=True)
    else:
        acc_ref[...] += jnp.sum(xp, axis=1, keepdims=True)

    @pl.when(k == last_k)
    def _finalize():
        # NOTE: rows past NC in a padded last row tile may hold Inf/NaN here;
        # they are never written back to the (NC, 1) output, so it's harmless.
        mean = acc_ref[...] * (1.0 / hw)                     # avg_pool over HW
        o_ref[...] = jnp.exp(jnp.log(mean) * (1.0 / p)).astype(o_ref.dtype)


def gem_pallas(x, p, *, target_block_bytes=8 * 1024 * 1024):
    """x: (N, C, H, W) float array, p: (1,) float -> (N, C, 1, 1) in x.dtype."""
    N, C, H, W = x.shape
    NC, HW = N * C, H * W
    itemsize = jnp.dtype(x.dtype).itemsize
    # Keep the native dtype through the DMA (halves HBM bytes for bf16 inputs
    # and avoids materializing an f32 copy in HBM before the kernel).
    x2d = x.reshape(NC, HW)
    p = p.astype(jnp.float32)
    compute_dtype = x.dtype if x.dtype == jnp.bfloat16 else jnp.float32
    # TODO(synk): for tiny spatial extents (HW < 128, e.g. 7x7 CNN heads) a
    # channels-on-lanes (HW, NC) layout would be fully lane-dense, but NCHW
    # inputs would need an extra HBM transpose pass, so it is not done here.

    block_rows, block_hw = _pick_tiles(NC, HW, itemsize, target_block_bytes)
    grid = (pl.cdiv(NC, block_rows), pl.cdiv(HW, block_hw))

    kernel = functools.partial(_gem_kernel, hw=HW, block_hw=block_hw,
                               compute_dtype=compute_dtype)

    # Double-buffered input tiles + (tiny) output/accumulator + headroom.
    in_tile_bytes = block_rows * block_hw * itemsize
    vmem_limit = 2 * in_tile_bytes + 4 * block_rows * 4 + (2 << 20)
    vmem_limit = int(min(max(vmem_limit, 16 << 20), 32 << 20))

    cost = pl.CostEstimate(
        flops=3 * NC * HW,                      # clamp + scale + reduce-add
        transcendentals=2 * NC * HW + 2 * NC,   # log+exp per element (+ final)
        bytes_accessed=NC * HW * itemsize + NC * itemsize + 4,
    )

    out2d = pl.pallas_call(
        kernel,
        out_shape=jax.ShapeDtypeStruct((NC, 1), x.dtype),
        grid_spec=pltpu.PrefetchScalarGridSpec(
            num_scalar_prefetch=0,
            grid=grid,
            in_specs=[
                pl.BlockSpec(memory_space=pltpu.SMEM),                      # p
                pl.BlockSpec((block_rows, block_hw), lambda i, k: (i, k)),  # x
            ],
            out_specs=pl.BlockSpec((block_rows, 1), lambda i, k: (i, 0)),
            scratch_shapes=[pltpu.VMEM((block_rows, 1), jnp.float32)],
        ),
        compiler_params=pltpu.CompilerParams(
            # Row tiles are independent (megacore-shardable); the spatial axis
            # is a reduction carried in the VMEM accumulator.
            dimension_semantics=("parallel", "arbitrary"),
            vmem_limit_bytes=vmem_limit,
        ),
        cost_estimate=cost,
    )(p, x2d)

    return out2d.reshape(N, C, 1, 1)


def gem_reference(x, p):
    # pure-JAX reference mirroring the PyTorch module
    xc = jnp.maximum(x.astype(jnp.float32), EPS)
    pooled = jnp.mean(xc ** p[0], axis=(-2, -1), keepdims=True)
    return pooled ** (1.0 / p[0])


if __name__ == "__main__":
    key = jax.random.PRNGKey(0)
    N, C, H, W = 2, 4, 16, 16
    x = jax.random.normal(key, (N, C, H, W), dtype=jnp.float32)

    # deterministic parameter init matching nn.Parameter(torch.ones(1) * 3)
    p = jnp.ones((1,), dtype=jnp.float32) * 3.0

    out = jax.block_until_ready(gem_pallas(x, p))
    ref = gem_reference(x, p)

    assert out.shape == (N, C, 1, 1)
    assert jnp.allclose(out, ref, rtol=1e-4, atol=1e-6), (out, ref)

    print("KERNEL_OK")
</pallas_src>

<mosaic_0001>
module attributes {stable_mosaic.version = 11 : i64} {
  func.func @_gem_kernel(%arg0: i32, %arg1: i32, %arg2: memref<1xf32, #tpu.memory_space<smem>>, %arg3: memref<8x256xf32, #tpu.memory_space<vmem>>, %arg4: memref<8x1xf32, #tpu.memory_space<vmem>>, %arg5: memref<8x1xf32, #tpu.memory_space<vmem>>) attributes {dimension_semantics = [#tpu.dimension_semantics<parallel>, #tpu.dimension_semantics<arbitrary>], iteration_bounds = array<i64: 1, 1>, scalar_prefetch = 0 : i64, scratch_operands = 1 : i64, tpu.core_type = #tpu.core_type<tc>, window_params = [{transform_indices = @transform_0, window_bounds = array<i64: 1>}, {transform_indices = @transform_1, window_bounds = array<i64: 8, 256>}, {transform_indices = @transform_2, window_bounds = array<i64: 8, 1>}]} {
    %c0_i32 = arith.constant 0 : i32
    %0 = arith.cmpi eq, %arg1, %c0_i32 : i32
    %1 = arith.extui %0 : i1 to i32
    %c0_i32_0 = arith.constant 0 : i32
    %2 = arith.cmpi ne, %1, %c0_i32_0 : i32
    scf.if %2 {
      %cst_10 = arith.constant 0.000000e+00 : f32
      %19 = vector.broadcast %cst_10 : f32 to vector<8x1xf32>
      %c0_11 = arith.constant 0 : index
      %c0_12 = arith.constant 0 : index
      %20 = vector.load %arg5[%c0_11, %c0_12] : memref<8x1xf32, #tpu.memory_space<vmem>>, vector<8x1xf32>
      tpu.vector_store %arg5[%c0_11, %c0_12], %19 {strides = array<i32>} : memref<8x1xf32, #tpu.memory_space<vmem>>, vector<8x1xf32>,
    } else {
    }
    %c0 = arith.constant 0 : index
    %3 = memref.load %arg2[%c0] : memref<1xf32, #tpu.memory_space<smem>>
    %c0_1 = arith.constant 0 : index
    %c0_2 = arith.constant 0 : index
    %4 = vector.load %arg3[%c0_1, %c0_2] : memref<8x256xf32, #tpu.memory_space<vmem>>, vector<8x256xf32>
    %cst = arith.constant 9.99999997E-7 : f32
    %5 = vector.broadcast %cst : f32 to vector<8x256xf32>
    %6 = arith.maximumf %4, %5 : vector<8x256xf32>
    %7 = math.log %6 : vector<8x256xf32>
    %8 = vector.broadcast %3 : f32 to vector<8x256xf32>
    %9 = arith.mulf %7, %8 : vector<8x256xf32>
    %10 = math.exp %9 : vector<8x256xf32>
    %c0_3 = arith.constant 0 : index
    %c0_4 = arith.constant 0 : index
    %11 = vector.load %arg5[%c0_3, %c0_4] : memref<8x1xf32, #tpu.memory_space<vmem>>, vector<8x1xf32>
    %cst_5 = arith.constant dense<0.000000e+00> : vector<8xf32>
    %12 = vector.multi_reduction <add>, %10, %cst_5 [1] : vector<8x256xf32> to vector<8xf32>
    %13 = vector.shape_cast %12 : vector<8xf32> to vector<8x1xf32>
    %14 = arith.addf %11, %13 : vector<8x1xf32>
    %c0_6 = arith.constant 0 : index
    %c0_7 = arith.constant 0 : index
    %15 = vector.load %arg5[%c0_6, %c0_7] : memref<8x1xf32, #tpu.memory_space<vmem>>, vector<8x1xf32>
    tpu.vector_store %arg5[%c0_6, %c0_7], %14 {strides = array<i32>} : memref<8x1xf32, #tpu.memory_space<vmem>>, vector<8x1xf32>,
    %c0_i32_8 = arith.constant 0 : i32
    %16 = arith.cmpi eq, %arg1, %c0_i32_8 : i32
    %17 = arith.extui %16 : i1 to i32
    %c0_i32_9 = arith.constant 0 : i32
    %18 = arith.cmpi ne, %17, %c0_i32_9 : i32
    scf.if %18 {
      %c0_10 = arith.constant 0 : index
      %c0_11 = arith.constant 0 : index
      %19 = vector.load %arg5[%c0_10, %c0_11] : memref<8x1xf32, #tpu.memory_space<vmem>>, vector<8x1xf32>
      %cst_12 = arith.constant 3.906250e-03 : f32
      %20 = vector.broadcast %cst_12 : f32 to vector<8x1xf32>
      %21 = arith.mulf %19, %20 : vector<8x1xf32>
      %22 = math.log %21 : vector<8x1xf32>
      %cst_13 = arith.constant 1.000000e+00 : f32
      %23 = arith.divf %cst_13, %3 : f32
      %24 = vector.broadcast %23 : f32 to vector<8x1xf32>
      %25 = arith.mulf %22, %24 : vector<8x1xf32>
      %26 = math.exp %25 : vector<8x1xf32>
      %c0_14 = arith.constant 0 : index
      %c0_15 = arith.constant 0 : index
      %27 = vector.load %arg4[%c0_14, %c0_15] : memref<8x1xf32, #tpu.memory_space<vmem>>, vector<8x1xf32>
      tpu.vector_store %arg4[%c0_14, %c0_15], %26 {strides = array<i32>} : memref<8x1xf32, #tpu.memory_space<vmem>>, vector<8x1xf32>,
    } else {
    }
    return
  }
  func.func @transform_0(%arg0: i32, %arg1: i32) -> i32 {
    %c0_i32 = arith.constant 0 : i32
    %c0_i32_0 = arith.constant 0 : i32
    return %c0_i32 : i32
  }
  func.func @transform_1(%arg0: i32, %arg1: i32) -> (i32, i32) {
    %c0_i32 = arith.constant 0 : i32
    return %arg0, %arg1 : i32, i32
  }
  func.func @transform_2(%arg0: i32, %arg1: i32) -> (i32, i32) {
    %c0_i32 = arith.constant 0 : i32
    %c0_i32_0 = arith.constant 0 : i32
    return %arg0, %c0_i32 : i32, i32
  }
}

</mosaic_0001>

<bundles_post_ra>
// kernel: tpu_custom_call.1
= control target key start
LH: loop header
LB: loop body
LE: loop exit
PB: predicated region body
PF: predicated region fallthrough
CT: control target
= control target key end

     0   :  { %8 = vsyncpa [#allocation5], 0  ;;  %s132_s12 = smov [#allocation4]   ;;  %s161_s0 = inlined_call_operand.<no memory space> [shape: f32[1], index: 0, kind: input, shape index: {}]   ;;  %s162_s1 = inlined_call_operand.hbm [shape: f32[8,256], index: 1, kind: input, shape index: {}]   ;;  %s163_s2 = inlined_call_operand.vmem [shape: f32[8,1], index: 2, kind: output, shape index: {}]  }
   0x1   :  { %s16_s11 = sshll.u32 %s162_s1, 4  ;;  %s18_s13 = sshll.u32 %s132_s12, 4  ;;  %s17_s11 = int_to_ptr.hbm [resolvable:$true] %s16_s11  ;;  %s19_s13 = int_to_ptr.vmem [resolvable:$true] %s18_s13 }
   0x2   :  { %21 = dma.hbm_to_vmem [thread:$0]  %s17_s11, 256, %s19_s13, [#allocation5]  }
   0x3   :  { %130 = dma.done.wait [#allocation5], 256  }
   0x4   :  { %131 = vsyncadd [#allocation5], 4294967040  ;;  %vm30_vm0 = vcmask 7168   ;;  %v41_v0 = vstv %s161_s0  ;;  %v133_v1 = vmov 0.0   ;;  %v33_v3 = vld [vmem:[#allocation4] sm:$0xff]  ;;  %v34_v4 = vld [vmem:[#allocation4 + $0x8] sm:$0xff] }
   0x5   :  { %31 = vst.msk [vmem:[#allocation2] sm:$0xff] %vm30_vm0, %v133_v1  ;;  %92 = vrcp.f32 %v41_v0  ;;  %v35_v5 = vmax.f32 %v33_v3, 1e-06  ;;  %v36_v6 = vmax.f32 %v34_v4, 1e-06  ;;  %vm68_vm1 = vweird.f32 %v41_v0 }
   0x6   :  { %v74_v8 = vand.u32 2147483648, %v41_v0  ;;  %v72_v10 = vand.u32 2147483647, %v41_v0 }
   0x7   :  { %94 = vlog2.f32 %v35_v5 }
   0x8   :  { %96 = vlog2.f32 %v36_v6  ;;  %v75_v12 = vor.u32 1.1754944e-38, %v74_v8  ;;  %vm73_vm4 = vcmp.eq.f32.partialorder %v72_v10, 8.507059e+37 }
   0xb   :  { %v93_v2 = vpop.eup %92 }
   0xc   :  { %v64_v7 = vmul.f32 %v93_v2, %v41_v0  ;;  %vm69_vm2 = vweird.f32 %v93_v2  ;;  %v48_v27 = vld [vmem:[#allocation2] sm:$0xff] }
   0xd   :  { %vm70_vm3 = vmor %vm68_vm1, %vm69_vm2  ;;  %v95_v14 = vpop.eup %94 }
   0xe   :  { %v65_v9 = vsub.f32 1.0, %v64_v7  ;;  %v97_v16 = vpop.eup %96  ;;  %v38_v17 = vmul.f32 0.6931472, %v95_v14 }
   0xf   :  { %v40_v19 = vmul.f32 0.6931472, %v97_v16 }
  0x10   :  { %v66_v11 = vmul.f32 %v93_v2, %v65_v9  ;;  %v42_v20 = vmul.f32 %v41_v0, %v38_v17 }
  0x11   :  { %v43_v21 = vmul.f32 %v41_v0, %v40_v19 }
  0x12   :  { %v67_v13 = vadd.f32 %v93_v2, %v66_v11  ;;  %v44_v22 = vmul.f32 1.442695, %v42_v20 }
  0x13   :  { %v46_v23 = vmul.f32 1.442695, %v43_v21 }
  0x14   :  { %v71_v15 = vsel %vm70_vm3, %v93_v2, %v67_v13  ;;  %98 = vpow2.f32 %v44_v22 }
  0x15   :  { %v76_v18 = vsel %vm73_vm4, %v75_v12, %v71_v15  ;;  %100 = vpow2.f32 %v46_v23 }
  0x16   :  { %88 = vpush %v76_v18 }
  0x1a   :  { %v99_v24 = vpop.eup %98 }
  0x1b   :  { %v101_v25 = vpop.eup %100 }
  0x1c   :  { %v49_v26 = vadd.f32 %v101_v25, %v99_v24 }
  0x1e   :  { %50 = vadd.xlane.f32.xlu0 %v49_v26 }
  0x47   :  { %s89_s0 = spop %88 }
  0x48   :  { %v78_v33 = vstv %s89_s0 }
  0x91   :  { %v51_v28 = vpop.xlane.xlu0 %50 }
  0x92   :  { %v52_v29 = vadd.f32 %v51_v28, %v48_v27 }
  0x94   :  { %54 = vst.msk [vmem:[#allocation2] sm:$0xff] %vm30_vm0, %v52_v29 }
  0x9b   :  { %v58_v30 = vld [vmem:[#allocation2] sm:$0xff] }
  0x9c   :  { %v59_v31 = vmul.f32 0.00390625, %v58_v30 }
  0x9e   :  { %102 = vlog2.f32 %v59_v31 }
  0xa4   :  { %v103_v32 = vpop.eup %102 }
  0xa5   :  { %v61_v34 = vmul.f32 0.6931472, %v103_v32 }
  0xa7   :  { %v79_v35 = vmul.f32 %v78_v33, %v61_v34 }
  0xa9   :  { %v80_v36 = vmul.f32 1.442695, %v79_v35 }
  0xab   :  { %104 = vpow2.f32 %v80_v36 }
  0xb1   :  { %v105_v37 = vpop.eup %104 }
  0xb2   :  { %82 = vst.msk [vmem:[%s163_s2] sm:$0xff] %vm30_vm0, %v105_v37 }
  0xb3   :  { %87 = vsyncpa [#allocation5], 1 }

</bundles_post_ra>
